<compile_context>
chip_gen: v7x
topology: tpu7x:2x2x1
jax: 0.10.0
libtpu: 0.0.40
codegen_flags: <defaults>
</compile_context>

<pallas_src>
import functools

import jax
import jax.numpy as jnp
from jax.experimental import pallas as pl
from jax.experimental.pallas import tpu as pltpu

_MIB = 1024 * 1024


# ----------------------------- helpers --------------------------------------
def _round_up(x, m):
    return ((x + m - 1) // m) * m


def _cdiv(a, b):
    return -(-a // b)


def _device_kind():
    try:
        return jax.devices()[0].device_kind.lower()
    except Exception:
        return ""


def _vmem_capacity_bytes():
    try:
        cap = int(pltpu.get_tpu_info().vmem_capacity_bytes)
        if cap >= 16 * _MIB:
            return cap
    except Exception:
        pass
    kind = _device_kind()
    if ("v7" in kind) or ("7x" in kind):
        return 64 * _MIB
    if ("v5" in kind) or ("v6" in kind):
        return 128 * _MIB
    return 64 * _MIB          # conservative fallback (v7x size)


def _pick_tile_links(n, per_link_bytes, budget, split_for_two_cores):
    """Largest 32-multiple link tile fitting the budget (rebalanced, >=8)."""
    tile = int(budget // max(per_link_bytes, 1))
    tile = max(8, (tile // 32) * 32)             # sublane-pack friendly
    tile = min(tile, _round_up(n, 8))            # never exceed padded link axis
    if split_for_two_cores and n > 32:
        # keep >= 2 link blocks only when the chip really has 2 TensorCores
        tile = min(tile, _round_up(_cdiv(n, 2), 32))
    tile = max(8, tile)
    nb = _cdiv(n, tile)                          # rebalance: fill the last block
    return max(8, _round_up(_cdiv(n, nb), 8))


def _pick_time_tile(t, per_elem_bytes, budget, min_links):
    """Largest 128-multiple time tile s.t. a min_links-row block fits budget."""
    t_full = _round_up(t, 128)
    cap = budget // max(min_links * per_elem_bytes, 1)
    cap = max(128, (cap // 128) * 128)
    return min(t_full, cap)


def _vmem_limit(work_bytes, ceiling):
    return int(min(ceiling, max(32 * _MIB, work_bytes + 8 * _MIB)))


# ----------------------------- kernels ---------------------------------------
def _powerlaw(excess, c, inv_b, bf16_eup):
    """R = exp(inv_b*log(excess) + c), zeroed where excess == 0."""
    safe = jnp.maximum(excess, 1e-12)
    if bf16_eup:
        # bf16 transcendentals on the EUP (v6e/v7x); the rest stays f32.
        logv = jnp.log(safe.astype(jnp.bfloat16)).astype(jnp.float32)
        arg = (inv_b * logv + c).astype(jnp.bfloat16)
        rain = jnp.exp(arg).astype(jnp.float32)
    else:
        rain = jnp.exp(inv_b * jnp.log(safe) + c)
    return jnp.where(excess > 0.0, rain, 0.0)


def _single_pass_kernel(tsl_ref, rsl_ref, prm_ref, out_ref, *, bf16_eup):
    # One block = a tile of links x the FULL time axis (baseline = min over T).
    att = tsl_ref[...].astype(jnp.float32) - rsl_ref[...].astype(jnp.float32)
    baseline = jnp.min(att, axis=-1, keepdims=True)          # [TL, 1]
    excess = jnp.maximum(att - baseline, 0.0)                 # [TL, T]
    c = prm_ref[:, 0:1]
    inv_b = prm_ref[:, 1:2]
    out_ref[...] = _powerlaw(excess, c, inv_b, bf16_eup).astype(out_ref.dtype)


def _baseline_min_kernel(tsl_ref, rsl_ref, min_ref, *, t_total, tt):
    # Phase 1 of the long-T path: per-link running min over time tiles.
    j = pl.program_id(1)

    @pl.when(j == 0)
    def _():
        min_ref[...] = jnp.full(min_ref.shape, jnp.inf, min_ref.dtype)

    att = tsl_ref[...].astype(jnp.float32) - rsl_ref[...].astype(jnp.float32)
    if t_total % tt != 0:
        # Mask the out-of-range columns of the (partial) last time tile so
        # edge-block garbage cannot corrupt the min.
        col = jax.lax.broadcasted_iota(jnp.int32, att.shape, 1)
        att = jnp.where(j * tt + col < t_total, att, jnp.inf)
    min_ref[...] = jnp.minimum(min_ref[...],
                               jnp.min(att, axis=-1, keepdims=True))


def _apply_powerlaw_kernel(tsl_ref, rsl_ref, base_ref, prm_ref, out_ref, *,
                           bf16_eup):
    # Phase 2 of the long-T path: fully parallel over (link, time) tiles.
    att = tsl_ref[...].astype(jnp.float32) - rsl_ref[...].astype(jnp.float32)
    excess = jnp.maximum(att - base_ref[...], 0.0)
    c = prm_ref[:, 0:1]
    inv_b = prm_ref[:, 1:2]
    out_ref[...] = _powerlaw(excess, c, inv_b, bf16_eup).astype(out_ref.dtype)


# ----------------------------- wrapper ----------------------------------------
def infer_multiple_cmls(tsl, rsl, a_coef, b_coef, length, *,
                        tile_links=None, time_tile=None,
                        out_dtype=jnp.bfloat16,
                        use_bf16_transcendentals=None):
    """Vectorized InferMultipleCMLs.forward.

    tsl, rsl               : [N, T] transmitted / received signal levels
                             (streamed in their incoming dtype; math in f32).
    a_coef, b_coef, length : [N] per-link power-law metadata.
    out_dtype              : dtype of the rain output (bf16 halves write bytes).
    Returns rain estimates stacked per link: [N, T]
    (== torch.stack([cml2rain(att_i, meta_i).flatten() for links], dim=0)).
    """
    n, t = tsl.shape
    f32 = jnp.float32
    in_bytes = jnp.dtype(tsl.dtype).itemsize
    out_bytes = jnp.dtype(out_dtype).itemsize

    # Per-link scalars; scale folded into the exponent, merged into one block:
    #   R = exp(inv_b*log(excess) + c),  c = inv_b*log(1/(a*L))
    inv_b = (1.0 / b_coef.astype(f32)).reshape(n, 1)
    c = inv_b * jnp.log(1.0 / (a_coef.astype(f32) *
                               length.astype(f32))).reshape(n, 1)
    params = jnp.concatenate([c, inv_b], axis=1)              # [N, 2] f32

    kind = _device_kind()
    two_tc = ("v7" in kind) or ("7x" in kind)                 # 2 TCs per chip
    bf16_eup_ok = any(s in kind for s in ("v6", "v7", "7x"))  # bf16 EUP chips
    if use_bf16_transcendentals is None:
        use_bf16_transcendentals = (bf16_eup_ok and
                                    jnp.dtype(out_dtype) == jnp.bfloat16)
    bf16_eup = bool(use_bf16_transcendentals) and bf16_eup_ok

    cap = _vmem_capacity_bytes()
    ceiling = max(32 * _MIB, cap - 16 * _MIB)   # keep headroom (v7x: 64 MiB)
    budget = int(0.6 * ceiling)

    # Byte model (double buffering and f32 temporaries included):
    per_elem_full = 4 * in_bytes + 2 * out_bytes + 20   # tsl+rsl+out + temps
    per_elem_min = 4 * in_bytes + 12                    # min pass (no [.,T] out)
    per_link_fixed = 2048        # lane-padded (tl,1)/(tl,2) f32 blocks x 2 bufs
    min_links = min(32, _round_up(n, 8))

    if time_tile is not None:
        assert time_tile % 128 == 0, "time_tile must be a multiple of 128"
        two_phase = time_tile < t
    else:
        two_phase = 8 * (per_elem_full * t + per_link_fixed) > budget

    def _links(per_link):
        if tile_links is not None:
            return max(8, _round_up(int(tile_links), 8))
        return _pick_tile_links(n, per_link, budget, two_tc)

    if not two_phase:
        # ------------------ single pass: whole T per block -------------------
        per_link = per_elem_full * t + per_link_fixed
        tl = _links(per_link)
        cost = pl.CostEstimate(
            flops=7 * n * t, transcendentals=2 * n * t,
            bytes_accessed=(2 * in_bytes + out_bytes) * n * t + 16 * n)
        return pl.pallas_call(
            functools.partial(_single_pass_kernel, bf16_eup=bf16_eup),
            out_shape=jax.ShapeDtypeStruct((n, t), out_dtype),
            grid=(pl.cdiv(n, tl),),
            in_specs=[pl.BlockSpec((tl, t), lambda i: (i, 0)),
                      pl.BlockSpec((tl, t), lambda i: (i, 0)),
                      pl.BlockSpec((tl, 2), lambda i: (i, 0))],
            out_specs=pl.BlockSpec((tl, t), lambda i: (i, 0)),
            compiler_params=pltpu.CompilerParams(
                dimension_semantics=("parallel",),
                vmem_limit_bytes=_vmem_limit(tl * per_link, ceiling)),
            cost_estimate=cost,
        )(tsl, rsl, params)

    # ---------------- phase 1: baseline = min over T (big tiles) -------------
    tt_min = _pick_time_tile(t, per_elem_min, budget, min_links)
    per_link_min = per_elem_min * tt_min + per_link_fixed
    tl_min = _links(per_link_min)
    baseline = pl.pallas_call(
        functools.partial(_baseline_min_kernel, t_total=t, tt=tt_min),
        out_shape=jax.ShapeDtypeStruct((n, 1), jnp.float32),
        grid=(pl.cdiv(n, tl_min), pl.cdiv(t, tt_min)),
        in_specs=[pl.BlockSpec((tl_min, tt_min), lambda i, j: (i, j)),
                  pl.BlockSpec((tl_min, tt_min), lambda i, j: (i, j))],
        out_specs=pl.BlockSpec((tl_min, 1), lambda i, j: (i, 0)),
        compiler_params=pltpu.CompilerParams(
            dimension_semantics=("parallel", "arbitrary"),
            vmem_limit_bytes=_vmem_limit(tl_min * per_link_min, ceiling)),
        cost_estimate=pl.CostEstimate(
            flops=2 * n * t, transcendentals=0,
            bytes_accessed=2 * in_bytes * n * t + 4 * n),
    )(tsl, rsl)

    # ---------------- phase 2: power law, parallel over (links, time) --------
    tt = (time_tile if time_tile is not None
          else _pick_time_tile(t, per_elem_full, budget, min_links))
    per_link_ap = per_elem_full * tt + 2 * per_link_fixed
    tl = _links(per_link_ap)
    return pl.pallas_call(
        functools.partial(_apply_powerlaw_kernel, bf16_eup=bf16_eup),
        out_shape=jax.ShapeDtypeStruct((n, t), out_dtype),
        grid=(pl.cdiv(n, tl), pl.cdiv(t, tt)),
        in_specs=[pl.BlockSpec((tl, tt), lambda i, j: (i, j)),
                  pl.BlockSpec((tl, tt), lambda i, j: (i, j)),
                  pl.BlockSpec((tl, 1), lambda i, j: (i, 0)),
                  pl.BlockSpec((tl, 2), lambda i, j: (i, 0))],
        out_specs=pl.BlockSpec((tl, tt), lambda i, j: (i, j)),
        compiler_params=pltpu.CompilerParams(
            dimension_semantics=("parallel", "parallel"),
            vmem_limit_bytes=_vmem_limit(tl * per_link_ap, ceiling)),
        cost_estimate=pl.CostEstimate(
            flops=7 * n * t, transcendentals=2 * n * t,
            bytes_accessed=(2 * in_bytes + out_bytes) * n * t + 20 * n),
    )(tsl, rsl, baseline, params)


# -------------------- pure-JAX reference for sanity check --------------------
def _reference(tsl, rsl, a_coef, b_coef, length):
    att = tsl - rsl
    baseline = jnp.min(att, axis=-1, keepdims=True)
    excess = jnp.maximum(att - baseline, 0.0)
    ratio = excess / (a_coef * length)[:, None]
    return jnp.where(ratio > 0.0,
                     jnp.power(jnp.maximum(ratio, 1e-12), 1.0 / b_coef[:, None]),
                     0.0)


if __name__ == "__main__":
    # TODO(synk): the generic `in_cml2rain_method` callable of the PyTorch
    # module is specialized here to the standard constant-min-baseline
    # power-law estimator; LinkSet iteration is replaced by stacked arrays.
    key = jax.random.PRNGKey(0)
    n_links, t_steps = 24, 512

    k1, k2, k3 = jax.random.split(key, 3)
    # Synthetic link set: tsl constant-ish, rsl fluctuating (rain fades).
    tsl = 10.0 + 0.1 * jax.random.normal(k1, (n_links, t_steps), jnp.float32)
    rsl = -40.0 - 5.0 * jnp.abs(jax.random.normal(k2, (n_links, t_steps),
                                                  jnp.float32))
    # Deterministic per-link metadata (frequency -> ITU-like power-law coeffs).
    freq_ghz = 18.0 + 0.25 * jnp.arange(n_links, dtype=jnp.float32)
    a_coef = 1e-4 * freq_ghz ** 2.0
    b_coef = 1.35 - 0.005 * freq_ghz
    length_km = 1.0 + 0.25 * jax.random.uniform(k3, (n_links,), jnp.float32)

    ref_f32 = _reference(tsl, rsl, a_coef, b_coef, length_km)

    # 1) default path: f32 inputs, bf16 output, bf16 EUP auto on v6e/v7x.
    out_bf16 = jax.block_until_ready(
        infer_multiple_cmls(tsl, rsl, a_coef, b_coef, length_km))
    assert out_bf16.shape == (n_links, t_steps)
    assert out_bf16.dtype == jnp.bfloat16
    assert jnp.allclose(out_bf16.astype(jnp.float32), ref_f32,
                        rtol=8e-2, atol=1e-1)

    # 2) f32 output, f32 transcendentals: tight check against the reference.
    out_f32 = jax.block_until_ready(
        infer_multiple_cmls(tsl, rsl, a_coef, b_coef, length_km,
                            out_dtype=jnp.float32,
                            use_bf16_transcendentals=False))
    assert jnp.allclose(out_f32, ref_f32, rtol=1e-4, atol=1e-4)

    # 3) forced two-call long-T path (min pass + apply pass), with a link count
    #    that is not a multiple of 8 and T not a multiple of 128, to exercise
    #    the edge-block masking on both axes.
    n_small, t_odd = 20, 500
    tsl3, rsl3 = tsl[:n_small, :t_odd], rsl[:n_small, :t_odd]
    out_tp = jax.block_until_ready(
        infer_multiple_cmls(tsl3, rsl3, a_coef[:n_small], b_coef[:n_small],
                            length_km[:n_small], out_dtype=jnp.float32,
                            use_bf16_transcendentals=False, time_tile=128))
    ref_tp = _reference(tsl3, rsl3, a_coef[:n_small], b_coef[:n_small],
                        length_km[:n_small])
    assert out_tp.shape == (n_small, t_odd)
    assert jnp.allclose(out_tp, ref_tp, rtol=1e-4, atol=1e-4)

    print("KERNEL_OK")
</pallas_src>

<mosaic_0001>
module attributes {stable_mosaic.version = 11 : i64} {
  func.func @_single_pass_kernel(%arg0: i32, %arg1: memref<24x512xf32, #tpu.memory_space<vmem>>, %arg2: memref<24x512xf32, #tpu.memory_space<vmem>>, %arg3: memref<24x2xf32, #tpu.memory_space<vmem>>, %arg4: memref<24x512xbf16, #tpu.memory_space<vmem>>) attributes {dimension_semantics = [#tpu.dimension_semantics<parallel>], iteration_bounds = array<i64: 1>, scalar_prefetch = 0 : i64, scratch_operands = 0 : i64, tpu.core_type = #tpu.core_type<tc>, window_params = [{transform_indices = @transform_0, window_bounds = array<i64: 24, 512>}, {transform_indices = @transform_1, window_bounds = array<i64: 24, 512>}, {transform_indices = @transform_2, window_bounds = array<i64: 24, 2>}, {transform_indices = @transform_3, window_bounds = array<i64: 24, 512>}]} {
    %c0 = arith.constant 0 : index
    %c0_0 = arith.constant 0 : index
    %0 = vector.load %arg1[%c0, %c0_0] : memref<24x512xf32, #tpu.memory_space<vmem>>, vector<24x512xf32>
    %c0_1 = arith.constant 0 : index
    %c0_2 = arith.constant 0 : index
    %1 = vector.load %arg2[%c0_1, %c0_2] : memref<24x512xf32, #tpu.memory_space<vmem>>, vector<24x512xf32>
    %2 = arith.subf %0, %1 : vector<24x512xf32>
    %cst = arith.constant dense<0x7F800000> : vector<24xf32>
    %3 = vector.multi_reduction <minimumf>, %2, %cst [1] : vector<24x512xf32> to vector<24xf32>
    %4 = vector.shape_cast %3 : vector<24xf32> to vector<24x1xf32>
    %5 = vector.broadcast %4 : vector<24x1xf32> to vector<24x512xf32>
    %6 = arith.subf %2, %5 : vector<24x512xf32>
    %cst_3 = arith.constant 0.000000e+00 : f32
    %7 = vector.broadcast %cst_3 : f32 to vector<24x512xf32>
    %8 = arith.maximumf %6, %7 : vector<24x512xf32>
    %c0_4 = arith.constant 0 : index
    %c0_5 = arith.constant 0 : index
    %9 = vector.load %arg3[%c0_4, %c0_5] : memref<24x2xf32, #tpu.memory_space<vmem>>, vector<24x1xf32>
    %c0_6 = arith.constant 0 : index
    %c1 = arith.constant 1 : index
    %10 = vector.load %arg3[%c0_6, %c1] : memref<24x2xf32, #tpu.memory_space<vmem>>, vector<24x1xf32>
    %cst_7 = arith.constant 9.99999996E-13 : f32
    %11 = vector.broadcast %cst_7 : f32 to vector<24x512xf32>
    %12 = arith.maximumf %8, %11 : vector<24x512xf32>
    %13 = math.log %12 : vector<24x512xf32>
    %14 = vector.broadcast %10 : vector<24x1xf32> to vector<24x512xf32>
    %15 = arith.mulf %14, %13 : vector<24x512xf32>
    %16 = vector.broadcast %9 : vector<24x1xf32> to vector<24x512xf32>
    %17 = arith.addf %15, %16 : vector<24x512xf32>
    %18 = math.exp %17 : vector<24x512xf32>
    %cst_8 = arith.constant 0.000000e+00 : f32
    %19 = vector.broadcast %cst_8 : f32 to vector<24x512xf32>
    %20 = arith.cmpf ogt, %8, %19 : vector<24x512xf32>
    %cst_9 = arith.constant 0.000000e+00 : f32
    %21 = vector.broadcast %cst_9 : f32 to vector<24x512xf32>
    %22 = arith.select %20, %18, %21 : vector<24x512xi1>, vector<24x512xf32>
    %23 = arith.truncf %22 : vector<24x512xf32> to vector<24x512xbf16>
    %c0_10 = arith.constant 0 : index
    %c0_11 = arith.constant 0 : index
    %24 = vector.load %arg4[%c0_10, %c0_11] : memref<24x512xbf16, #tpu.memory_space<vmem>>, vector<24x512xbf16>
    tpu.vector_store %arg4[%c0_10, %c0_11], %23 {strides = array<i32>} : memref<24x512xbf16, #tpu.memory_space<vmem>>, vector<24x512xbf16>,
    return
  }
  func.func @transform_0(%arg0: i32) -> (i32, i32) {
    %c0_i32 = arith.constant 0 : i32
    %c0_i32_0 = arith.constant 0 : i32
    return %arg0, %c0_i32 : i32, i32
  }
  func.func @transform_1(%arg0: i32) -> (i32, i32) {
    %c0_i32 = arith.constant 0 : i32
    %c0_i32_0 = arith.constant 0 : i32
    return %arg0, %c0_i32 : i32, i32
  }
  func.func @transform_2(%arg0: i32) -> (i32, i32) {
    %c0_i32 = arith.constant 0 : i32
    %c0_i32_0 = arith.constant 0 : i32
    return %arg0, %c0_i32 : i32, i32
  }
  func.func @transform_3(%arg0: i32) -> (i32, i32) {
    %c0_i32 = arith.constant 0 : i32
    %c0_i32_0 = arith.constant 0 : i32
    return %arg0, %c0_i32 : i32, i32
  }
}

</mosaic_0001>

<bundles_post_ra>
// kernel: tpu_custom_call.1
= control target key start
LH: loop header
LB: loop body
LE: loop exit
PB: predicated region body
PF: predicated region fallthrough
CT: control target
= control target key end

     0   :  { %8 = vsyncpa [#allocation3], 0  ;;  %s615_s0 = inlined_call_operand.hbm [shape: f32[24,512], index: 0, kind: input, shape index: {}]   ;;  %s616_s1 = inlined_call_operand.hbm [shape: f32[24,512], index: 1, kind: input, shape index: {}]   ;;  %s617_s2 = inlined_call_operand.vmem [shape: f32[24,2], index: 2, kind: input, shape index: {}]   ;;  %s618_s3 = inlined_call_operand.hbm [shape: bf16[24,512], index: 3, kind: output, shape index: {}]  }
   0x1   :  { %9 = vsyncpa [#allocation6], 0 }
   0x2   :  { %10 = vsyncpa [#allocation4], 0  ;;  %s465_s12 = smov [#allocation2]   ;;  %s393_s16 = scalar_lea.hbm %s615_s0, 1536 }
   0x3   :  { %s16_s13 = sshll.u32 %s465_s12, 4  ;;  %p394_p0 = scmp.ne.s32.totalorder %s615_s0, %s393_s16  ;;  %s17_s13 = int_to_ptr.vmem [resolvable:$true] %s16_s13 }
   0x4   :  { %p397_p1 = scmp.lt.u32.totalorder %s393_s16, %s615_s0 }
   0x6   :  { %p399_p2 = pnand %p397_p1, %p394_p0 }
   0x8   :  { %402 = shalt.err (!%p399_p2)
}
   0x9   :  { %s403_s21 = scalar_lea.vmem %s17_s13, 1536  ;;  %p408_p4 = scmp.lt.s32.totalorder %s17_s13, %s17_s13 }
   0xa   :  { %p404_p3 = scmp.ne.s32.totalorder %s17_s13, %s403_s21  ;;  %p409_p5 = scmp.lt.s32.totalorder %s403_s21, %s403_s21 }
   0xc   :  { %p410_p6 = por %p409_p5, %p408_p4 }
   0xe   :  { %p411_p7 = pnand %p410_p6, %p404_p3 }
  0x10   :  { %414 = shalt.err (!%p411_p7)
}
  0x11   :  { %s466_s22 = smov 512   ;;  %s467_s23 = smov 32  }
  0x12   :  { %22 = dma.hbm_to_vmem [thread:$0]  %s615_s0, 1536, %s17_s13, [#allocation3], %s466_s22, %s466_s22, %s467_s23  }
  0x13   :  { %s468_s26 = smov [#allocation5]   ;;  %s415_s30 = scalar_lea.hbm %s616_s1, 1536 }
  0x14   :  { %s28_s27 = sshll.u32 %s468_s26, 4  ;;  %p416_p8 = scmp.ne.s32.totalorder %s616_s1, %s415_s30  ;;  %s29_s27 = int_to_ptr.vmem [resolvable:$true] %s28_s27 }
  0x15   :  { %p419_p9 = scmp.lt.u32.totalorder %s415_s30, %s616_s1 }
  0x17   :  { %p421_p10 = pnand %p419_p9, %p416_p8 }
  0x19   :  { %424 = shalt.err (!%p421_p10)
}
  0x1a   :  { %s425_s8 = scalar_lea.vmem %s29_s27, 1536  ;;  %p430_p12 = scmp.lt.s32.totalorder %s29_s27, %s29_s27 }
  0x1b   :  { %p426_p11 = scmp.ne.s32.totalorder %s29_s27, %s425_s8  ;;  %p431_p13 = scmp.lt.s32.totalorder %s425_s8, %s425_s8 }
  0x1d   :  { %p432_p0 = por %p431_p13, %p430_p12 }
  0x1f   :  { %p433_p1 = pnand %p432_p0, %p426_p11 }
  0x21   :  { %436 = shalt.err (!%p433_p1)
}
  0x22   :  { %34 = dma.hbm_to_vmem [thread:$0]  %s616_s1, 1536, %s29_s27, [#allocation6], %s466_s22, %s466_s22, %s467_s23  }
  0x23   :  { %459 = dma.done.wait [#allocation3], 1536  }
  0x24   :  { %460 = vsyncadd [#allocation3], 4294965760 }
  0x25   :  { %461 = dma.done.wait [#allocation6], 1536  }
  0x26   :  { %462 = vsyncadd [#allocation6], 4294965760  ;;  %v469_v0 = vmov 1   ;;  %v51_v1 = vld [vmem:[#allocation2 + $0x40] sm:$0xff]  ;;  %v52_v2 = vld [vmem:[#allocation2 + $0x48] sm:$0xff]  ;;  %v470_v48 = vmov 0  }
  0x27   :  { %341 = vset.pattern.permute.xlu1 %v469_v0  ;;  %342 = vset.pattern.permute.xlu0 %v469_v0  ;;  %v53_v3 = vld [vmem:[#allocation2 + $0x50] sm:$0xff]  ;;  %v54_v4 = vld [vmem:[#allocation2 + $0x58] sm:$0xff]  ;;  %v63_v5 = vld [vmem:[#allocation5 + $0x40] sm:$0xff] }
  0x28   :  { %v64_v6 = vld [vmem:[#allocation5 + $0x48] sm:$0xff]  ;;  %v65_v7 = vld [vmem:[#allocation5 + $0x50] sm:$0xff]  ;;  %v66_v8 = vld [vmem:[#allocation5 + $0x58] sm:$0xff]  ;;  %v75_v9 = vsub.f32 %v51_v1, %v63_v5 }
  0x29   :  { %v76_v10 = vsub.f32 %v52_v2, %v64_v6  ;;  %v43_v11 = vld [vmem:[#allocation2] sm:$0xff]  ;;  %v77_v12 = vsub.f32 %v53_v3, %v65_v7  ;;  %v78_v13 = vsub.f32 %v54_v4, %v66_v8  ;;  %v44_v14 = vld [vmem:[#allocation2 + $0x8] sm:$0xff]  ;;  %v45_v15 = vld [vmem:[#allocation2 + $0x10] sm:$0xff] }
  0x2a   :  { %v46_v16 = vld [vmem:[#allocation2 + $0x18] sm:$0xff]  ;;  %v55_v17 = vld [vmem:[#allocation5] sm:$0xff]  ;;  %v56_v18 = vld [vmem:[#allocation5 + $0x8] sm:$0xff] }
  0x2b   :  { %v57_v19 = vld [vmem:[#allocation5 + $0x10] sm:$0xff]  ;;  %v89_v20 = vmin.f32 %v75_v9, %v77_v12  ;;  %v90_v21 = vmin.f32 %v76_v10, %v78_v13  ;;  %v58_v22 = vld [vmem:[#allocation5 + $0x18] sm:$0xff]  ;;  %v67_v23 = vsub.f32 %v43_v11, %v55_v17  ;;  %v68_v24 = vsub.f32 %v44_v14, %v56_v18  ;;  %v47_v25 = vld [vmem:[#allocation2 + $0x20] sm:$0xff] }
  0x2c   :  { %v48_v26 = vld [vmem:[#allocation2 + $0x28] sm:$0xff]  ;;  %v69_v27 = vsub.f32 %v45_v15, %v57_v19  ;;  %v70_v28 = vsub.f32 %v46_v16, %v58_v22  ;;  %v49_v29 = vld [vmem:[#allocation2 + $0x30] sm:$0xff]  ;;  %v50_v30 = vld [vmem:[#allocation2 + $0x38] sm:$0xff] }
  0x2d   :  { %v59_v31 = vld [vmem:[#allocation5 + $0x20] sm:$0xff]  ;;  %v91_v32 = vmin.f32 %v89_v20, %v90_v21  ;;  %v60_v33 = vld [vmem:[#allocation5 + $0x28] sm:$0xff]  ;;  %v61_v34 = vld [vmem:[#allocation5 + $0x30] sm:$0xff] }
  0x2e   :  { %v62_v35 = vld [vmem:[#allocation5 + $0x38] sm:$0xff]  ;;  %v518_v36 = vsub.f32 %v47_v25, %v59_v31  ;;  %v79_v37 = vmin.f32 %v67_v23, %v69_v27  ;;  %v80_v38 = vmin.f32 %v68_v24, %v70_v28  ;;  %v520_v39 = vsub.f32 %v48_v26, %v60_v33  ;;  %v118_v46 = vld [vmem:[%s617_s2] sm:$0xff]  ;;  %v120_v47 = vld [vmem:[%s617_s2 + $0x10] sm:$0xff] }
  0x2f   :  { %v522_v40 = vsub.f32 %v49_v29, %v61_v34  ;;  %92 = vmin.xlane.f32.xlu1 %v91_v32  ;;  %v524_v41 = vsub.f32 %v50_v30, %v62_v35  ;;  %v119_v49 = vld [vmem:[%s617_s2 + $0x8] sm:$0xff]  ;;  %s471_s2 = smov [#allocation7]  }
  0x30   :  { %v81_v42 = vmin.f32 %v79_v37, %v80_v38  ;;  %s307_s15 = sshll.u32 %s471_s2, 4  ;;  %s308_s15 = int_to_ptr.vmem [resolvable:$true] %s307_s15 }
  0x31   :  { %v84_v43 = vmin.f32 %v518_v36, %v522_v40  ;;  %v85_v44 = vmin.f32 %v520_v39, %v524_v41  ;;  %s437_s16 = scalar_lea.vmem %s308_s15, 768  ;;  %p442_p3 = scmp.lt.s32.totalorder %s308_s15, %s308_s15 }
  0x32   :  { %82 = vmin.xlane.f32.xlu0 %v81_v42  ;;  %p438_p2 = scmp.ne.s32.totalorder %s308_s15, %s437_s16  ;;  %p443_p4 = scmp.lt.s32.totalorder %s437_s16, %s437_s16 }
  0x33   :  { %v86_v45 = vmin.f32 %v84_v43, %v85_v44 }
  0x34   :  { %p444_p5 = por %p443_p4, %p442_p3 }
  0x36   :  { %87 = vmin.xlane.f32.xlu0 %v86_v45  ;;  %p445_p6 = pnand %p444_p5, %p438_p2 }
  0x40   :  { %159 = vperm.xlu1 %341, %v118_v46  }
  0x44   :  { %169 = vperm.xlu1 %341, %v120_v47  }
  0x48   :  { %343 = vset.pattern.permute.xlu1 %v470_v48 }
  0x49   :  { %185 = vperm.xlu1 %343, %v118_v46  }
  0x4c   :  { %164 = vperm.xlu0 %342, %v119_v49  }
  0x4d   :  { %189 = vperm.xlu1 %343, %v119_v49  }
  0x50   :  { %344 = vset.pattern.permute.xlu0 %v470_v48 }
  0x51   :  { %193 = vperm.xlu1 %343, %v120_v47  }
  0xbc   :  { %v93_v50 = vpop.xlane.xlu1 %92 }
  0xbd   :  { %v102_v51 = vsub.f32 %v75_v9, %v93_v50  ;;  %v103_v52 = vsub.f32 %v76_v10, %v93_v50  ;;  %v104_v53 = vsub.f32 %v77_v12, %v93_v50  ;;  %v105_v54 = vsub.f32 %v78_v13, %v93_v50 }
  0xbf   :  { %v539_v55 = vmax.f32 %v102_v51, 0.0  ;;  %v541_v56 = vmax.f32 %v103_v52, 0.0  ;;  %v543_v57 = vmax.f32 %v104_v53, 0.0  ;;  %v545_v58 = vmax.f32 %v105_v54, 0.0  ;;  %v83_v59 = vpop.xlane.xlu0 %82 }
  0xc0   :  { %v94_v60 = vsub.f32 %v67_v23, %v83_v59  ;;  %v95_v61 = vsub.f32 %v68_v24, %v83_v59  ;;  %v96_v62 = vsub.f32 %v69_v27, %v83_v59  ;;  %v97_v63 = vsub.f32 %v70_v28, %v83_v59  ;;  %v547_v0 = vpop.permute.xlu1 %159 }
  0xc1   :  { %v129_v1 = vmax.f32 %v539_v55, 1e-12  ;;  %v130_v2 = vmax.f32 %v541_v56, 1e-12  ;;  %v131_v3 = vmax.f32 %v543_v57, 1e-12 }
  0xc2   :  { %v132_v4 = vmax.f32 %v545_v58, 1e-12  ;;  %v553_v5 = vmax.f32 %v94_v60, 0.0  ;;  %v555_v6 = vmax.f32 %v95_v61, 0.0  ;;  %v557_v8 = vmax.f32 %v96_v62, 0.0 }
  0xc3   :  { %345 = vlog2.f32 %v129_v1  ;;  %v88_v7 = vpop.xlane.xlu0 %87  ;;  %v559_v9 = vmax.f32 %v97_v63, 0.0  ;;  %vm240_vm0 = vcmp.gt.f32.partialorder %v539_v55, 0.0  ;;  %vm241_vm1 = vcmp.gt.f32.partialorder %v541_v56, 0.0 }
  0xc4   :  { %347 = vlog2.f32 %v130_v2  ;;  %v98_v10 = vsub.f32 %v518_v36, %v88_v7  ;;  %v170_v11 = vpop.permute.xlu1 %169  ;;  %v121_v12 = vmax.f32 %v553_v5, 1e-12  ;;  %v122_v13 = vmax.f32 %v555_v6, 1e-12 }
  0xc5   :  { %349 = vlog2.f32 %v131_v3  ;;  %v123_v14 = vmax.f32 %v557_v8, 1e-12  ;;  %v124_v15 = vmax.f32 %v559_v9, 1e-12  ;;  %v99_v16 = vsub.f32 %v520_v39, %v88_v7 }
  0xc6   :  { %351 = vlog2.f32 %v132_v4  ;;  %v100_v17 = vsub.f32 %v522_v40, %v88_v7  ;;  %v101_v18 = vsub.f32 %v524_v41, %v88_v7  ;;  %v569_v19 = vmax.f32 %v98_v10, 0.0 }
  0xc7   :  { %353 = vlog2.f32 %v121_v12  ;;  %v571_v21 = vmax.f32 %v99_v16, 0.0  ;;  %vm242_vm2 = vcmp.gt.f32.partialorder %v543_v57, 0.0  ;;  %vm243_vm3 = vcmp.gt.f32.partialorder %v545_v58, 0.0 }
  0xc8   :  { %355 = vlog2.f32 %v122_v13  ;;  %v186_v20 = vpop.permute.xlu1 %185  ;;  %v573_v22 = vmax.f32 %v100_v17, 0.0  ;;  %v575_v23 = vmax.f32 %v101_v18, 0.0  ;;  %v125_v24 = vmax.f32 %v569_v19, 1e-12 }
  0xc9   :  { %357 = vlog2.f32 %v123_v14  ;;  %v126_v25 = vmax.f32 %v571_v21, 1e-12  ;;  %vm232_vm4 = vcmp.gt.f32.partialorder %v553_v5, 0.0  ;;  %vm233_vm5 = vcmp.gt.f32.partialorder %v555_v6, 0.0 }
  0xca   :  { %359 = vlog2.f32 %v124_v15  ;;  %v127_v26 = vmax.f32 %v573_v22, 1e-12  ;;  %v128_v27 = vmax.f32 %v575_v23, 1e-12  ;;  %vm234_vm6 = vcmp.gt.f32.partialorder %v557_v8, 0.0 }
  0xcb   :  { %361 = vlog2.f32 %v125_v24  ;;  %v165_v10 = vpop.permute.xlu0 %164  ;;  %vm235_vm7 = vcmp.gt.f32.partialorder %v559_v9, 0.0  ;;  %vm236_vm8 = vcmp.gt.f32.partialorder %v569_v19, 0.0  ;;  %vm237_vm9 = vcmp.gt.f32.partialorder %v571_v21, 0.0 }
  0xcc   :  { %v581_v28 = vpop.permute.xlu1 %189  ;;  %363 = vlog2.f32 %v126_v25  ;;  %vm238_vm10 = vcmp.gt.f32.partialorder %v573_v22, 0.0  ;;  %vm239_vm11 = vcmp.gt.f32.partialorder %v575_v23, 0.0 }
  0xcd   :  { %v346_v29 = vpop.eup %345  ;;  %365 = vlog2.f32 %v127_v26 }
  0xce   :  { %v348_v30 = vpop.eup %347  ;;  %v150_v31 = vmul.f32 0.6931472, %v346_v29  ;;  %367 = vlog2.f32 %v128_v27 }
  0xcf   :  { %v350_v32 = vpop.eup %349  ;;  %v152_v33 = vmul.f32 0.6931472, %v348_v30 }
  0xd0   :  { %v352_v34 = vpop.eup %351  ;;  %v154_v35 = vmul.f32 0.6931472, %v350_v32  ;;  %v180_v36 = vmul.f32 %v170_v11, %v150_v31  ;;  %v194_v37 = vpop.permute.xlu1 %193 }
  0xd1   :  { %v354_v38 = vpop.eup %353  ;;  %v156_v39 = vmul.f32 0.6931472, %v352_v34  ;;  %v181_v40 = vmul.f32 %v170_v11, %v152_v33 }
  0xd2   :  { %v356_v41 = vpop.eup %355  ;;  %v134_v42 = vmul.f32 0.6931472, %v354_v38  ;;  %v182_v43 = vmul.f32 %v170_v11, %v154_v35  ;;  %v204_v44 = vadd.f32 %v194_v37, %v180_v36 }
  0xd3   :  { %v358_v45 = vpop.eup %357  ;;  %v136_v46 = vmul.f32 0.6931472, %v356_v41  ;;  %v183_v47 = vmul.f32 %v170_v11, %v156_v39  ;;  %v205_v48 = vadd.f32 %v194_v37, %v181_v40 }
  0xd4   :  { %v360_v49 = vpop.eup %359  ;;  %v138_v50 = vmul.f32 0.6931472, %v358_v45  ;;  %v172_v51 = vmul.f32 %v547_v0, %v134_v42  ;;  %v206_v52 = vadd.f32 %v194_v37, %v182_v43  ;;  %v224_v53 = vmul.f32 1.442695, %v204_v44 }
  0xd5   :  { %v140_v54 = vmul.f32 0.6931472, %v360_v49  ;;  %v173_v59 = vmul.f32 %v547_v0, %v136_v46  ;;  %v207_v60 = vadd.f32 %v194_v37, %v183_v47  ;;  %v226_v61 = vmul.f32 1.442695, %v205_v48  ;;  %v362_v2 = vpop.eup %361 }
  0xd6   :  { %v174_v62 = vmul.f32 %v547_v0, %v138_v50  ;;  %v196_v63 = vadd.f32 %v186_v20, %v172_v51  ;;  %369 = vpow2.f32 %v224_v53  ;;  %v228_v1 = vmul.f32 1.442695, %v206_v52  ;;  %v364_v11 = vpop.eup %363 }
  0xd7   :  { %v175_v3 = vmul.f32 %v547_v0, %v140_v54  ;;  %v197_v4 = vadd.f32 %v186_v20, %v173_v59  ;;  %371 = vpow2.f32 %v226_v61  ;;  %v230_v7 = vmul.f32 1.442695, %v207_v60  ;;  %v366_v15 = vpop.eup %365 }
  0xd8   :  { %v198_v12 = vadd.f32 %v186_v20, %v174_v62  ;;  %v208_v13 = vmul.f32 1.442695, %v196_v63  ;;  %373 = vpow2.f32 %v228_v1  ;;  %v142_v14 = vmul.f32 0.6931472, %v362_v2  ;;  %v368_v24 = vpop.eup %367 }
  0xd9   :  { %v199_v16 = vadd.f32 %v186_v20, %v175_v3  ;;  %v210_v17 = vmul.f32 1.442695, %v197_v4  ;;  %375 = vpow2.f32 %v230_v7  ;;  %v144_v18 = vmul.f32 0.6931472, %v364_v11 }
  0xda   :  { %377 = vpow2.f32 %v208_v13  ;;  %v212_v25 = vmul.f32 1.442695, %v198_v12  ;;  %v146_v26 = vmul.f32 0.6931472, %v366_v15  ;;  %v176_v27 = vmul.f32 %v165_v10, %v142_v14 }
  0xdb   :  { %379 = vpow2.f32 %v210_v17  ;;  %v214_v0 = vmul.f32 1.442695, %v199_v16  ;;  %v148_v29 = vmul.f32 0.6931472, %v368_v24  ;;  %v177_v30 = vmul.f32 %v165_v10, %v144_v18 }
  0xdc   :  { %381 = vpow2.f32 %v212_v25  ;;  %v178_v31 = vmul.f32 %v165_v10, %v146_v26  ;;  %v200_v32 = vadd.f32 %v581_v28, %v176_v27 }
  0xdd   :  { %383 = vpow2.f32 %v214_v0  ;;  %v179_v33 = vmul.f32 %v165_v10, %v148_v29  ;;  %v201_v20 = vadd.f32 %v581_v28, %v177_v30 }
  0xde   :  { %v202_v34 = vadd.f32 %v581_v28, %v178_v31  ;;  %v216_v35 = vmul.f32 1.442695, %v200_v32 }
  0xdf   :  { %v203_v36 = vadd.f32 %v581_v28, %v179_v33  ;;  %v218_v37 = vmul.f32 1.442695, %v201_v20 }
  0xe0   :  { %v370_v38 = vpop.eup %369  ;;  %385 = vpow2.f32 %v216_v35  ;;  %v220_v39 = vmul.f32 1.442695, %v202_v34 }
  0xe1   :  { %v372_v40 = vpop.eup %371  ;;  %v252_v41 = vsel %vm240_vm0, %v370_v38, 0.0  ;;  %387 = vpow2.f32 %v218_v37  ;;  %v222_v42 = vmul.f32 1.442695, %v203_v36 }
  0xe2   :  { %v374_v43 = vpop.eup %373  ;;  %v253_v44 = vsel %vm241_vm1, %v372_v40, 0.0  ;;  %389 = vpow2.f32 %v220_v39 }
  0xe3   :  { %v376_v45 = vpop.eup %375  ;;  %v254_v28 = vsel %vm242_vm2, %v374_v43, 0.0  ;;  %v330_v46 = vpack.c.bf16 %v253_v44, %v252_v41  ;;  %391 = vpow2.f32 %v222_v42 }
  0xe4   :  { %v378_v55 = vpop.eup %377  ;;  %v255_v47 = vsel %vm243_vm3, %v376_v45, 0.0 }
  0xe5   :  { %v380_v48 = vpop.eup %379  ;;  %v244_v56 = vsel %vm232_vm4, %v378_v55, 0.0  ;;  %v331_v49 = vpack.c.bf16 %v255_v47, %v254_v28  ;;  %300 = vst [vmem:[#allocation7 + $0x20] sm:$0xff] %v330_v46 }
  0xe6   :  { %v382_v50 = vpop.eup %381  ;;  %v245_v57 = vsel %vm233_vm5, %v380_v48, 0.0 }
  0xe7   :  { %v384_v51 = vpop.eup %383  ;;  %v246_v58 = vsel %vm234_vm6, %v382_v50, 0.0  ;;  %v326_v52 = vpack.c.bf16 %v245_v57, %v244_v56  ;;  %301 = vst [vmem:[#allocation7 + $0x28] sm:$0xff] %v331_v49 }
  0xe8   :  { %v247_v53 = vsel %vm235_vm7, %v384_v51, 0.0 }
  0xe9   :  { %v327_v54 = vpack.c.bf16 %v247_v53, %v246_v58  ;;  %296 = vst [vmem:[#allocation7] sm:$0xff] %v326_v52 }
  0xea   :  { %v386_v5 = vpop.eup %385 }
  0xeb   :  { %v388_v6 = vpop.eup %387  ;;  %297 = vst [vmem:[#allocation7 + $0x8] sm:$0xff] %v327_v54  ;;  %v248_v59 = vsel %vm236_vm8, %v386_v5, 0.0 }
  0xec   :  { %v390_v8 = vpop.eup %389  ;;  %v249_v9 = vsel %vm237_vm9, %v388_v6, 0.0 }
  0xed   :  { %v392_v60 = vpop.eup %391  ;;  %v250_v61 = vsel %vm238_vm10, %v390_v8, 0.0  ;;  %v328_v62 = vpack.c.bf16 %v249_v9, %v248_v59 }
  0xee   :  { %v251_v63 = vsel %vm239_vm11, %v392_v60, 0.0 }
  0xef   :  { %v329_v1 = vpack.c.bf16 %v251_v63, %v250_v61  ;;  %298 = vst [vmem:[#allocation7 + $0x10] sm:$0xff] %v328_v62 }
  0xf1   :  { %299 = vst [vmem:[#allocation7 + $0x18] sm:$0xff] %v329_v1 }
  0xf2   :  { %448 = shalt.err (!%p445_p6)
}
  0xf3   :  { %s449_s19 = scalar_lea.hbm %s618_s3, 768 }
  0xf4   :  { %p450_p7 = scmp.ne.s32.totalorder %s618_s3, %s449_s19  ;;  %p453_p8 = scmp.lt.u32.totalorder %s449_s19, %s618_s3 }
  0xf6   :  { %p455_p9 = pnand %p453_p8, %p450_p7 }
  0xf8   :  { %458 = shalt.err (!%p455_p9)
}
  0xf9   :  { %s472_s24 = smov 256   ;;  %s473_s25 = smov 16  }
  0xfa   :  { %313 = dma.vmem_to_hbm [thread:$0]  %s308_s15, 768, %s618_s3, [#allocation4], %s472_s24, %s472_s24, %s473_s25  }
  0xfb   :  { %463 = dma.done.wait [#allocation4], 768  }
  0xfc   :  { %464 = vsyncadd [#allocation4], 4294966528 }
  0xfd   :  { %317 = vsyncpa [#allocation3], 1 }
  0xfe   :  { %318 = vsyncpa [#allocation6], 1 }
  0xff   :  { %319 = vsyncpa [#allocation4], 1 }

</bundles_post_ra>
